<compile_context>
chip_gen: v5e
topology: v5e:2x2
jax: 0.10.0
libtpu: 0.0.40
codegen_flags: <defaults>
</compile_context>

<pallas_src>
import functools

import jax
import jax.numpy as jnp
from jax.experimental import pallas as pl
from jax.experimental.pallas import tpu as pltpu


_VMEM = pl.BlockSpec(memory_space=pltpu.MemorySpace.VMEM)


def _round_up(x, m):
    return ((x + m - 1) // m) * m


def _num_tensorcores():
    """Best-effort detection of TensorCores visible to one program (v7x/megacore=2)."""
    try:
        kind = jax.devices()[0].device_kind.lower()
    except Exception:
        return 1
    for tag in ("v7", "v5p", "v4"):
        if tag in kind:
            return 2
    return 1


def _pick_bk_block(bk_pad, num_cores):
    """Split rows across TCs on 2-core chips; cap at 256 (v6e/v7x MXU width)."""
    per_core = _round_up(-(-bk_pad // max(1, num_cores)), 8)
    return max(8, min(per_core, 256))


def _reorder_gates_ifgo_to_ifog(w, hd):
    """Last dim is 4*hd in PyTorch LSTM order [i,f,g,o]; regroup to [i,f,o,g]."""
    return jnp.concatenate(
        [w[..., : 2 * hd], w[..., 3 * hd: 4 * hd], w[..., 2 * hd: 3 * hd]],
        axis=-1,
    )


# ----------------------------------------------------------------------------
# Encoder stand-in (one shot): relu(flatten(data[:, 0:1]) @ W + b)
# ----------------------------------------------------------------------------
def _encoder_kernel(x_ref, w_ref, b_ref, o_ref):
    o_ref[...] = jnp.maximum(
        jnp.dot(x_ref[...], w_ref[...], preferred_element_type=jnp.float32)
        + b_ref[...],
        0.0,
    )


def encode_pallas(x_flat, w, b):
    B = x_flat.shape[0]
    out_sz = w.shape[1]
    return pl.pallas_call(
        _encoder_kernel,
        out_shape=jax.ShapeDtypeStruct((B, out_sz), jnp.float32),
        in_specs=[_VMEM, _VMEM, _VMEM],
        out_specs=_VMEM,
    )(x_flat, w, b)


# ----------------------------------------------------------------------------
# Fused recurrence kernel: all program_len timesteps inside one pallas_call.
# ----------------------------------------------------------------------------
def _fused_recurrence_kernel(
    xf_ref, gum_ref, w_ihx_ref, b_gates_ref, w_cat_ref,
    w_fc1_ref, b_fc1_ref, w_out_ref, b_out_ref,
    out_ref, samp_ref,
    *, hd_sz, num_draws, program_len, ndp_pad,
):
    f32 = jnp.float32
    bf16 = jnp.bfloat16
    bkb = xf_ref.shape[0]

    # Weights stay resident in VMEM for the whole recurrence (constant index_maps).
    w_ihx = w_ihx_ref[...]
    w_cat = w_cat_ref[...]          # stacked [emb_gate_table ; w_hh] -> one gate matmul
    w_fc1 = w_fc1_ref[...]
    w_out = w_out_ref[...]
    b_gates = b_gates_ref[...]
    b_fc1 = b_fc1_ref[...]
    b_out = b_out_ref[...]

    # x_f is constant over time: fold its gate contribution + biases once (prologue).
    xf_gates = (
        jnp.dot(xf_ref[...].astype(bf16), w_ihx, preferred_element_type=f32)
        + b_gates
    )

    # Pre-generated Gumbel noise (prologue load; per-step use is a static slice).
    gum = gum_ref[...]

    col_tok = jax.lax.broadcasted_iota(jnp.int32, (bkb, ndp_pad), 1)
    col_out_i = jax.lax.broadcasted_iota(jnp.int32, (bkb, num_draws), 1)
    col_out_f = col_out_i.astype(f32)
    one_bf = jnp.ones((), bf16)
    zero_bf = jnp.zeros((), bf16)

    # Loop carry (pure in-register state, never touches HBM).
    h_bf = jnp.zeros((bkb, hd_sz), bf16)
    c = jnp.zeros((bkb, hd_sz), f32)
    prev_tok = jnp.full((bkb, 1), num_draws, dtype=jnp.int32)   # initial "stop" token

    hd3 = 3 * hd_sz
    # Fully unrolled: program_len is a small compile-time constant; gives the
    # scheduler cross-iteration visibility and makes every slice/store static.
    for t in range(program_len):
        # relu(dense_input_op(one_hot(prev))) and the LSTM input-hidden matmul are
        # pre-folded into w_cat's first rows -> one fused matmul on [onehot | h].
        onehot = jnp.where(col_tok == prev_tok, one_bf, zero_bf)
        inp = jnp.concatenate([onehot, h_bf], axis=1)            # (bkb, ndp_pad+hd)
        gates = xf_gates + jnp.dot(inp, w_cat, preferred_element_type=f32)

        # Gate columns reordered at init to [i, f, o, g]:
        # one contiguous sigmoid slice (3*hd lanes) + one tanh slice (hd lanes).
        sig = jax.nn.sigmoid(gates[:, :hd3])
        g_g = jnp.tanh(gates[:, hd3:])
        i_g = sig[:, :hd_sz]
        f_g = sig[:, hd_sz:2 * hd_sz]
        o_g = sig[:, 2 * hd_sz:hd3]
        c = f_g * c + i_g * g_g
        h_bf = (o_g * jnp.tanh(c)).astype(bf16)                  # cast once per step

        # hd = relu(dense_fc_1(out)); logits = dense_output(hd); dropout = identity
        hd_act = jnp.maximum(
            jnp.dot(h_bf, w_fc1, preferred_element_type=f32) + b_fc1, 0.0)
        logits = (
            jnp.dot(hd_act.astype(bf16), w_out, preferred_element_type=f32)
            + b_out
        )

        # Multinomial sample via Gumbel-max on RAW logits (shift-invariant), so the
        # softmax normalization stays off the logits -> new_tok critical path.
        g_t = gum[:, t * num_draws:(t + 1) * num_draws]
        scores = logits + g_t
        smax = jnp.max(scores, axis=1, keepdims=True)
        new_tok_f = jnp.min(
            jnp.where(scores >= smax, col_out_f, float(num_draws)),
            axis=1, keepdims=True)
        prev_tok = new_tok_f.astype(jnp.int32)                   # (bkb, 1)

        # outputs[:, t] = log_softmax(logits)[sample]  (off the critical path)
        m = jnp.max(logits, axis=1, keepdims=True)
        lse = m + jnp.log(jnp.sum(jnp.exp(logits - m), axis=1, keepdims=True))
        picked_logit = jnp.sum(
            jnp.where(col_out_i == prev_tok, logits, 0.0), axis=1, keepdims=True)

        # Direct per-step stores (no O(T^2) masked accumulation carries).
        out_ref[:, t:t + 1] = picked_logit - lse
        samp_ref[:, t:t + 1] = prev_tok


@functools.lru_cache(maxsize=None)
def make_fused_recurrence(program_len, bk_pad, bk_block, in_sz, hd_sz,
                          num_draws, ndp_pad):
    kernel = functools.partial(
        _fused_recurrence_kernel,
        hd_sz=hd_sz, num_draws=num_draws,
        program_len=program_len, ndp_pad=ndp_pad)
    g4 = 4 * hd_sz
    kcat = ndp_pad + hd_sz
    tn = program_len * num_draws
    row = lambda b: (b, 0)
    const = lambda b: (0, 0)
    return pl.pallas_call(
        kernel,
        out_shape=(
            jax.ShapeDtypeStruct((bk_pad, program_len), jnp.float32),
            jax.ShapeDtypeStruct((bk_pad, program_len), jnp.int32),
        ),
        grid=(bk_pad // bk_block,),
        in_specs=[
            pl.BlockSpec((bk_block, in_sz), row),        # x_f
            pl.BlockSpec((bk_block, tn), row),           # pre-generated gumbel noise
            pl.BlockSpec((in_sz, g4), const),            # w_ihx
            pl.BlockSpec((1, g4), const),                # b_gates (b_ih + b_hh)
            pl.BlockSpec((kcat, g4), const),             # stacked [emb_tab ; w_hh]
            pl.BlockSpec((hd_sz, hd_sz), const),         # w_fc1
            pl.BlockSpec((1, hd_sz), const),             # b_fc1
            pl.BlockSpec((hd_sz, num_draws), const),     # w_out
            pl.BlockSpec((1, num_draws), const),         # b_out
        ],
        out_specs=(
            pl.BlockSpec((bk_block, program_len), row),
            pl.BlockSpec((bk_block, program_len), row),
        ),
        compiler_params=pltpu.CompilerParams(
            dimension_semantics=("parallel",),
            vmem_limit_bytes=32 * 1024 * 1024,
        ),
    )


# ----------------------------------------------------------------------------
# ImitateJoint (JAX/Pallas version)
# ----------------------------------------------------------------------------
class ImitateJointPallas:
    def __init__(self, hd_sz, input_size, num_draws, canvas_shape, key):
        self.hd_sz = hd_sz
        self.in_sz = input_size
        self.num_draws = num_draws
        self.canvas_shape = canvas_shape
        self.input_op_sz = 128
        self.num_cores = _num_tensorcores()

        H, W = canvas_shape
        ks = jax.random.split(key, 10)
        s = 0.1
        f32 = jnp.float32
        bf16 = jnp.bfloat16

        g4 = 4 * hd_sz
        ndp = num_draws + 1
        self.ndp_pad = _round_up(ndp, 8)

        # Synthetic parameters in "PyTorch layout", stored transposed: (in, out).
        # Gate columns start in PyTorch LSTM order [i, f, g, o].
        w_enc = (s * jax.random.normal(ks[0], (H * W, input_size))).astype(f32)
        b_enc = jnp.zeros((1, input_size), f32)
        w_emb = (s * jax.random.normal(ks[1], (ndp, self.input_op_sz))).astype(f32)
        b_emb = (s * jax.random.normal(ks[2], (1, self.input_op_sz))).astype(f32)
        w_ihx = (s * jax.random.normal(ks[3], (input_size, g4))).astype(f32)
        w_ihe = (s * jax.random.normal(ks[4], (self.input_op_sz, g4))).astype(f32)
        w_hh = (s * jax.random.normal(ks[5], (hd_sz, g4))).astype(f32)
        b_gates = (s * jax.random.normal(ks[6], (1, g4))).astype(f32)   # b_ih + b_hh
        w_fc1 = (s * jax.random.normal(ks[7], (hd_sz, hd_sz))).astype(f32)
        b_fc1 = jnp.zeros((1, hd_sz), f32)
        w_out = (s * jax.random.normal(ks[8], (hd_sz, num_draws))).astype(f32)
        b_out = jnp.zeros((1, num_draws), f32)

        # Fold dense_input_op(+ReLU) and its LSTM input-hidden matmul into a
        # per-token gate-contribution table (one-hot matmul == row gather).
        emb_tab = jnp.maximum(w_emb + b_emb, 0.0) @ w_ihe               # (ndp, 4*hd)
        emb_tab = jnp.pad(emb_tab, ((0, self.ndp_pad - ndp), (0, 0)))

        # Fuse the two per-step gate matmuls: one weight for [onehot | h].
        w_cat = jnp.concatenate([emb_tab, w_hh], axis=0)                # (ndp_pad+hd, 4*hd)

        # Reorder gate columns [i,f,g,o] -> [i,f,o,g] so the kernel needs a single
        # wide sigmoid slice and a single tanh slice.
        w_ihx = _reorder_gates_ifgo_to_ifog(w_ihx, hd_sz)
        w_cat = _reorder_gates_ifgo_to_ifog(w_cat, hd_sz)
        b_gates = _reorder_gates_ifgo_to_ifog(b_gates, hd_sz)

        self.params = {
            "w_enc": w_enc, "b_enc": b_enc,
            "w_ihx": w_ihx.astype(bf16), "b_gates": b_gates,
            "w_cat": w_cat.astype(bf16),
            "w_fc1": w_fc1.astype(bf16), "b_fc1": b_fc1,
            "w_out": w_out.astype(bf16), "b_out": b_out,
        }
        self._rng_key = ks[9]

    def encode(self, data_c0):
        # data_c0: (B, 1, H, W) -> (B, in_sz)
        B = data_c0.shape[0]
        x_flat = data_c0.reshape(B, -1).astype(jnp.float32)
        return encode_pallas(x_flat, self.params["w_enc"], self.params["b_enc"])

    def forward(self, x, k=1, swor=False):
        if swor:
            # TODO(synk): swor=True needs gumbel_with_maximum / compute_log_R (not in source).
            raise NotImplementedError("swor=True path is not implemented")

        data, program_len, _epoch_n = x
        batch_size = data.shape[0]
        bk = batch_size * k
        T = int(program_len)

        # x_f = encoder.encode(data[:, 0:1]).view(1, B, in_sz).repeat(1, k, 1)
        x_f = self.encode(data[:, 0:1, :, :])
        xf_flat = jnp.tile(
            x_f.reshape(1, batch_size, self.in_sz), (1, k, 1)
        ).reshape(bk, self.in_sz)

        # Pad batch*k to full f32 sublanes; split across TensorCores when available.
        bk_pad = max(8, _round_up(bk, 8))
        bk_block = _pick_bk_block(bk_pad, self.num_cores)
        bk_pad = _round_up(bk_pad, bk_block)
        xf_pad = jnp.pad(xf_flat, ((0, bk_pad - bk), (0, 0)))

        # Gumbel noise for every (row, step, draw): generated once, consumed
        # per step inside the kernel via static slices.
        gumbel = jax.random.gumbel(
            self._rng_key, (bk_pad, T * self.num_draws), dtype=jnp.float32)

        fused = make_fused_recurrence(
            T, bk_pad, bk_block, self.in_sz, self.hd_sz,
            self.num_draws, self.ndp_pad)
        p = self.params
        outputs_pad, samples_pad = fused(
            xf_pad, gumbel, p["w_ihx"], p["b_gates"], p["w_cat"],
            p["w_fc1"], p["b_fc1"], p["w_out"], p["b_out"])

        outputs = outputs_pad[:bk]
        samples = samples_pad[:bk]          # int32 token indices
        # entropy_element / ent_plot are only updated on the swor=True path in the
        # reference; zeros match the swor=False semantics.
        entropy_element = jnp.zeros((batch_size,), jnp.float32)
        ent_plot = jnp.zeros((batch_size,), jnp.float32)

        return [outputs, samples, entropy_element, [], [], [], [], [], ent_plot]


# ----------------------------------------------------------------------------
# Demo
# ----------------------------------------------------------------------------
if __name__ == "__main__":
    key = jax.random.PRNGKey(0)
    k_model, k_data = jax.random.split(key)

    batch, channels, H, W = 2, 4, 16, 16
    hd_sz, in_sz, num_draws = 32, 32, 16
    program_len = 8

    model = ImitateJointPallas(
        hd_sz=hd_sz, input_size=in_sz, num_draws=num_draws,
        canvas_shape=[H, W], key=k_model,
    )

    data = jax.random.uniform(k_data, (batch, channels, H, W), dtype=jnp.float32)
    result = model.forward([data, program_len, 0], k=1, swor=False)

    outputs, samples = result[0], result[1]
    jax.block_until_ready(outputs)
    jax.block_until_ready(samples)
    jax.block_until_ready(result[2])
    jax.block_until_ready(result[8])

    assert outputs.shape == (batch, program_len)
    assert samples.shape == (batch, program_len)
    assert bool(jnp.all(jnp.isfinite(outputs)))
    assert bool(jnp.all(outputs <= 0.0))                       # log-probabilities
    assert bool(jnp.all((samples >= 0) & (samples < num_draws)))
    print("KERNEL_OK")
</pallas_src>

<mosaic_0001>
module attributes {stable_mosaic.version = 11 : i64} {
  func.func @_encoder_kernel(%arg0: memref<2x256xf32, #tpu.memory_space<vmem>>, %arg1: memref<256x32xf32, #tpu.memory_space<vmem>>, %arg2: memref<1x32xf32, #tpu.memory_space<vmem>>, %arg3: memref<2x32xf32, #tpu.memory_space<vmem>>) attributes {dimension_semantics = [], scalar_prefetch = 0 : i64, scratch_operands = 0 : i64, tpu.core_type = #tpu.core_type<tc>} {
    %c0 = arith.constant 0 : index
    %c0_0 = arith.constant 0 : index
    %0 = vector.load %arg0[%c0, %c0_0] : memref<2x256xf32, #tpu.memory_space<vmem>>, vector<2x256xf32>
    %c0_1 = arith.constant 0 : index
    %c0_2 = arith.constant 0 : index
    %1 = vector.load %arg1[%c0_1, %c0_2] : memref<256x32xf32, #tpu.memory_space<vmem>>, vector<256x32xf32>
    %cst = arith.constant dense<0.000000e+00> : vector<2x32xf32>
    %2 = tpu.matmul %0, %1, %cst {dimension_numbers = #tpu.dot_dimension_numbers<[1], [0], [0], [1], [0, 0, 1, 1], [], []>} : vector<2x256xf32>, vector<256x32xf32>, vector<2x32xf32> -> vector<2x32xf32>
    %c0_3 = arith.constant 0 : index
    %c0_4 = arith.constant 0 : index
    %3 = vector.load %arg2[%c0_3, %c0_4] : memref<1x32xf32, #tpu.memory_space<vmem>>, vector<1x32xf32>
    %4 = vector.broadcast %3 : vector<1x32xf32> to vector<2x32xf32>
    %5 = arith.addf %2, %4 : vector<2x32xf32>
    %cst_5 = arith.constant 0.000000e+00 : f32
    %6 = vector.broadcast %cst_5 : f32 to vector<2x32xf32>
    %7 = arith.maximumf %5, %6 : vector<2x32xf32>
    %c0_6 = arith.constant 0 : index
    %c0_7 = arith.constant 0 : index
    %8 = vector.load %arg3[%c0_6, %c0_7] : memref<2x32xf32, #tpu.memory_space<vmem>>, vector<2x32xf32>
    tpu.vector_store %arg3[%c0_6, %c0_7], %7 {strides = array<i32>} : memref<2x32xf32, #tpu.memory_space<vmem>>, vector<2x32xf32>,
    return
  }
}

</mosaic_0001>

<bundles_post_ra>
// kernel: tpu_custom_call.1
= control target key start
LH: loop header
LB: loop body
LE: loop exit
PB: predicated region body
PF: predicated region fallthrough
CT: control target
= control target key end

     0   :  { %s271_s0 = inlined_call_operand.vmem [shape: f32[2,256], index: 0, kind: input, shape index: {}]   ;;  %s272_s1 = inlined_call_operand.vmem [shape: f32[256,32], index: 1, kind: input, shape index: {}]   ;;  %s273_s2 = inlined_call_operand.vmem [shape: f32[1,32], index: 2, kind: input, shape index: {}]   ;;  %s274_s3 = inlined_call_operand.hbm [shape: f32[2,32], index: 3, kind: output, shape index: {}]  }
   0x1   :  { %v31_v0 = vld [vmem:[%s272_s1 + $0x78] sm:$0xff]  ;;  %v30_v1 = vld [vmem:[%s272_s1 + $0x70] sm:$0xff]  ;;  %v29_v4 = vld [vmem:[%s272_s1 + $0x68] sm:$0xff] }
   0x2   :  { %v47_v2 = vld [vmem:[%s272_s1 + $0xf8] sm:$0xff]  ;;  %58 = vmatpush.msra.mxu0 %v31_v0  ;;  %v46_v3 = vld [vmem:[%s272_s1 + $0xf0] sm:$0xff]  ;;  %v45_v5 = vld [vmem:[%s272_s1 + $0xe8] sm:$0xff] }
   0x3   :  { %78 = vmatpush.msra.mxu1 %v47_v2  ;;  %v28_v6 = vld [vmem:[%s272_s1 + $0x60] sm:$0xff]  ;;  %v27_v8 = vld [vmem:[%s272_s1 + $0x58] sm:$0xff]  ;;  %v26_v10 = vld [vmem:[%s272_s1 + $0x50] sm:$0xff] }
   0x4   :  { %59 = vmatpush.msra.mxu0 %v30_v1  ;;  %v44_v7 = vld [vmem:[%s272_s1 + $0xe0] sm:$0xff]  ;;  %v43_v9 = vld [vmem:[%s272_s1 + $0xd8] sm:$0xff]  ;;  %v42_v11 = vld [vmem:[%s272_s1 + $0xd0] sm:$0xff] }
   0x5   :  { %79 = vmatpush.msra.mxu1 %v46_v3  ;;  %v25_v12 = vld [vmem:[%s272_s1 + $0x48] sm:$0xff]  ;;  %v15_v14 = vld [vmem:[%s271_s0] sm:$0xf] }
   0x6   :  { %60 = vmatpush.msra.mxu0 %v29_v4  ;;  %v41_v13 = vld [vmem:[%s272_s1 + $0xc8] sm:$0xff]  ;;  %53 = vst [vmem:[#allocation1] ss:$4 sm:$0xff] %v15_v14  ;;  %v24_v15 = vld [vmem:[%s272_s1 + $0x40] sm:$0xff] }
   0x7   :  { %80 = vmatpush.msra.mxu1 %v45_v5  ;;  %v40_v16 = vld [vmem:[%s272_s1 + $0xc0] sm:$0xff] }
   0x8   :  { %61 = vmatpush.msra.mxu0 %v28_v6 }
   0x9   :  { %81 = vmatpush.msra.mxu1 %v44_v7 }
   0xa   :  { %62 = vmatpush.msra.mxu0 %v27_v8 }
   0xb   :  { %82 = vmatpush.msra.mxu1 %v43_v9 }
   0xc   :  { %63 = vmatpush.msra.mxu0 %v26_v10 }
   0xd   :  { %83 = vmatpush.msra.mxu1 %v42_v11 }
   0xe   :  { %8 = vsyncpa [#allocation3], 0  ;;  %64 = vmatpush.msra.mxu0 %v25_v12  ;;  %v23_v17 = vld [vmem:[%s272_s1 + $0x38] sm:$0xff]  ;;  %v22_v19 = vld [vmem:[%s272_s1 + $0x30] sm:$0xff]  ;;  %s145_s24 = smov [#allocation2]   ;;  %vm99_vm0 = vcmask 254976  }
   0xf   :  { %84 = vmatpush.msra.mxu1 %v41_v13  ;;  %v39_v18 = vld [vmem:[%s272_s1 + $0xb8] sm:$0xff]  ;;  %v38_v20 = vld [vmem:[%s272_s1 + $0xb0] sm:$0xff]  ;;  %v21_v21 = vld [vmem:[%s272_s1 + $0x28] sm:$0xff]  ;;  %s106_s25 = sshll.u32 %s145_s24, 4  ;;  %s107_s25 = int_to_ptr.vmem [resolvable:$true] %s106_s25 }
  0x10   :  { %65 = vmatpush.msra.mxu0 %v24_v15  ;;  %v37_v22 = vld [vmem:[%s272_s1 + $0xa8] sm:$0xff]  ;;  %v20_v23 = vld [vmem:[%s272_s1 + $0x20] sm:$0xff]  ;;  %v19_v25 = vld [vmem:[%s272_s1 + $0x18] sm:$0xff] }
  0x11   :  { %85 = vmatpush.msra.mxu1 %v40_v16  ;;  %v36_v24 = vld [vmem:[%s272_s1 + $0xa0] sm:$0xff]  ;;  %v35_v26 = vld [vmem:[%s272_s1 + $0x98] sm:$0xff]  ;;  %v18_v27 = vld [vmem:[%s272_s1 + $0x10] sm:$0xff] }
  0x12   :  { %66 = vmatpush.msra.mxu0 %v23_v17  ;;  %v34_v28 = vld [vmem:[%s272_s1 + $0x90] sm:$0xff]  ;;  %v17_v29 = vld [vmem:[%s272_s1 + $0x8] sm:$0xff]  ;;  %v16_v31 = vld [vmem:[%s272_s1] sm:$0xff] }
  0x13   :  { %86 = vmatpush.msra.mxu1 %v39_v18  ;;  %v33_v30 = vld [vmem:[%s272_s1 + $0x88] sm:$0xff]  ;;  %v32_v32 = vld [vmem:[%s272_s1 + $0x80] sm:$0xff]  ;;  %s108_s1 = sshll.u32 %s274_s3, 4  ;;  %s109_s1 = int_to_ptr.hbm [resolvable:$true] %s108_s1 }
  0x14   :  { %67 = vmatpush.msra.mxu0 %v22_v19  ;;  %v54_v33 = vld.sshfl [vmem:[#allocation1] sm:$0xff pattern:$0x73625140]  ;;  %v55_v34 = vld.sshfl [vmem:[#allocation1 + $0x8] sm:$0xff pattern:$0x73625140] }
  0x15   :  { %87 = vmatpush.msra.mxu1 %v38_v20  ;;  %v118_v35 = vld [vmem:[%s273_s2] ss:$0 sm:$0xff] }
  0x16   :  { %68 = vmatpush.msra.mxu0 %v21_v21 }
  0x17   :  { %88 = vmatpush.msra.mxu1 %v37_v22 }
  0x18   :  { %69 = vmatpush.msra.mxu0 %v20_v23 }
  0x19   :  { %89 = vmatpush.msra.mxu1 %v36_v24 }
  0x1a   :  { %70 = vmatpush.msra.mxu0 %v19_v25 }
  0x1b   :  { %90 = vmatpush.msra.mxu1 %v35_v26 }
  0x1c   :  { %71 = vmatpush.msra.mxu0 %v18_v27 }
  0x1d   :  { %91 = vmatpush.msra.mxu1 %v34_v28 }
  0x1e   :  { %72 = vmatpush.msra.mxu0 %v17_v29 }
  0x1f   :  { %92 = vmatpush.msra.mxu1 %v33_v30 }
  0x20   :  { %73 = vmatpush.msra.mxu0 %v16_v31 }
  0x21   :  { %93 = vmatpush.msra.mxu1 %v32_v32  ;;  %74 = vmatmul.f32.vlgmr.msra.gmra.mxu0 %v54_v33 }
  0x22   :  { %94 = vmatmul.f32.vlgmr.msra.gmra.mxu1 %v55_v34 }
  0x9e   :  { %v75_v36 = vpop.f32.mrf.mxu0 }
  0x9f   :  { %v95_v37 = vpop.f32.mrf.mxu1  ;;  %v76_v38 = vadd.f32 %v118_v35, %v75_v36 }
  0xa1   :  { %v96_v39 = vadd.f32 %v95_v37, %v76_v38 }
  0xa3   :  { %v98_v40 = vmax.f32 %v96_v39, 0.0 }
  0xa5   :  { %100 = vst.msk [vmem:[#allocation2] sm:$0x3] %vm99_vm0, %v98_v40 }
  0xa6   :  { %111 = dma.vmem_to_hbm [thread:$0]  %s107_s25, 32, %s109_s1, [#allocation3]  }
  0xa7   :  { %143 = dma.done.wait [#allocation3], 32  }
  0xa8   :  { %144 = vsyncadd [#allocation3], 4294967264 }
  0xa9   :  { %116 = vsyncpa [#allocation3], 1 }

</bundles_post_ra>
